<compile_context>
chip_gen: v7x
topology: tpu7x:2x2x1
jax: 0.10.0
libtpu: 0.0.40
codegen_flags: <defaults>
</compile_context>

<pallas_src>
import jax
import jax.numpy as jnp
from jax.experimental import pallas as pl
from jax.experimental.pallas import tpu as pltpu

IN_DIM = 1024
HID_DIM = 64
OUT_DIM = 36
OUT_PAD = 128          # lane-dense padded output width
MAX_TB = 1024          # batch tile: 4 MiB f32 x-tile, comfortable on v5e/v6e/v7x VMEM


def _round_up(x, m):
    return ((x + m - 1) // m) * m


def mlp_kernel(x_ref, w1_ref, b1_ref, w2_ref, b2_ref, o_ref):
    # hidden = relu(x @ W1 + b1)           (MXU matmul, f32 accumulate)
    h = jnp.dot(x_ref[...], w1_ref[...], preferred_element_type=jnp.float32)
    h = jnp.maximum(h + b1_ref[...], 0.0)  # bias + ReLU on the VPU
    # out = hidden @ W2_padded + b2_padded (padded to 128 lanes -> dense stores)
    o = jnp.dot(h, w2_ref[...], preferred_element_type=jnp.float32)
    o_ref[...] = (o + b2_ref[...]).astype(o_ref.dtype)


def neural_net_forward(x, w1, b1, w2, b2):
    """x: (B, 1024) f32; w1: (1024, 64); b1: (64,); w2: (64, 36); b2: (36,)."""
    B = x.shape[0]

    # Batch tile: multiple of 8 (f32 sublane), capped at MAX_TB rows.
    tb = min(MAX_TB, _round_up(B, 8))
    b_pad = _round_up(B, tb)
    if b_pad != B:
        # Pad the ragged final tile with zeros; padded rows are sliced off below.
        x = jnp.pad(x, ((0, b_pad - B), (0, 0)))

    # Lane-dense (128-wide) second layer: zero-pad weight columns and bias.
    w2_p = jnp.pad(w2, ((0, 0), (0, OUT_PAD - OUT_DIM)))
    b2_p = jnp.pad(b2, ((0, OUT_PAD - OUT_DIM),)).reshape(1, OUT_PAD)
    b1_2d = b1.reshape(1, HID_DIM)

    grid = (b_pad // tb,)
    out_padded = pl.pallas_call(
        mlp_kernel,
        out_shape=jax.ShapeDtypeStruct((b_pad, OUT_PAD), jnp.float32),
        grid_spec=pltpu.PrefetchScalarGridSpec(
            num_scalar_prefetch=0,
            grid=grid,
            in_specs=[
                # x is tiled along batch and pipelined.
                pl.BlockSpec((tb, IN_DIM), lambda i: (i, 0)),
                # Weights / biases: constant index_map -> DMA'd once, stay in VMEM.
                pl.BlockSpec((IN_DIM, HID_DIM), lambda i: (0, 0)),
                pl.BlockSpec((1, HID_DIM), lambda i: (0, 0)),
                pl.BlockSpec((HID_DIM, OUT_PAD), lambda i: (0, 0)),
                pl.BlockSpec((1, OUT_PAD), lambda i: (0, 0)),
            ],
            out_specs=pl.BlockSpec((tb, OUT_PAD), lambda i: (i, 0)),
        ),
        compiler_params=pltpu.CompilerParams(
            # batch tiles are independent -> shard across v7x's 2 TensorCores.
            dimension_semantics=("parallel",),
        ),
    )(x, w1, b1_2d, w2_p, b2_p)

    # Strip batch padding and the lane padding on the output dim.
    return out_padded[:B, :OUT_DIM]


def init_params(key):
    # Deterministic init mimicking nn.Linear's uniform(-1/sqrt(fan_in), 1/sqrt(fan_in)).
    k1, k2, k3, k4 = jax.random.split(key, 4)
    bound1 = 1.0 / (IN_DIM ** 0.5)
    bound2 = 1.0 / (HID_DIM ** 0.5)
    # Stored as (in, out) = PyTorch weight transposed.
    w1 = jax.random.uniform(k1, (IN_DIM, HID_DIM), jnp.float32, -bound1, bound1)
    b1 = jax.random.uniform(k2, (HID_DIM,), jnp.float32, -bound1, bound1)
    w2 = jax.random.uniform(k3, (HID_DIM, OUT_DIM), jnp.float32, -bound2, bound2)
    b2 = jax.random.uniform(k4, (OUT_DIM,), jnp.float32, -bound2, bound2)
    return w1, b1, w2, b2


if __name__ == "__main__":
    key = jax.random.PRNGKey(0)
    kx, kp = jax.random.split(key)
    B = 8
    x = jax.random.normal(kx, (B, IN_DIM), jnp.float32)
    w1, b1, w2, b2 = init_params(kp)

    out = neural_net_forward(x, w1, b1, w2, b2)
    out = jax.block_until_ready(out)

    # Reference check in plain JAX (same math as the PyTorch module).
    ref = jnp.maximum(x @ w1 + b1, 0.0) @ w2 + b2
    assert out.shape == (B, OUT_DIM)
    assert jnp.allclose(out, ref, atol=1e-4, rtol=1e-4)

    print("KERNEL_OK")
</pallas_src>

<mosaic_0001>
module attributes {stable_mosaic.version = 11 : i64} {
  func.func @mlp_kernel(%arg0: i32, %arg1: memref<8x1024xf32, #tpu.memory_space<vmem>>, %arg2: memref<1024x64xf32, #tpu.memory_space<vmem>>, %arg3: memref<1x64xf32, #tpu.memory_space<vmem>>, %arg4: memref<64x128xf32, #tpu.memory_space<vmem>>, %arg5: memref<1x128xf32, #tpu.memory_space<vmem>>, %arg6: memref<8x128xf32, #tpu.memory_space<vmem>>) attributes {dimension_semantics = [#tpu.dimension_semantics<parallel>], iteration_bounds = array<i64: 1>, scalar_prefetch = 0 : i64, scratch_operands = 0 : i64, tpu.core_type = #tpu.core_type<tc>, window_params = [{transform_indices = @transform_0, window_bounds = array<i64: 8, 1024>}, {pipeline_mode = #tpu.pipeline_mode<synchronous>, transform_indices = @transform_1, window_bounds = array<i64: 1024, 64>}, {pipeline_mode = #tpu.pipeline_mode<synchronous>, transform_indices = @transform_2, window_bounds = array<i64: 1, 64>}, {pipeline_mode = #tpu.pipeline_mode<synchronous>, transform_indices = @transform_3, window_bounds = array<i64: 64, 128>}, {pipeline_mode = #tpu.pipeline_mode<synchronous>, transform_indices = @transform_4, window_bounds = array<i64: 1, 128>}, {transform_indices = @transform_5, window_bounds = array<i64: 8, 128>}]} {
    %c0 = arith.constant 0 : index
    %c0_0 = arith.constant 0 : index
    %0 = vector.load %arg1[%c0, %c0_0] : memref<8x1024xf32, #tpu.memory_space<vmem>>, vector<8x1024xf32>
    %c0_1 = arith.constant 0 : index
    %c0_2 = arith.constant 0 : index
    %1 = vector.load %arg2[%c0_1, %c0_2] : memref<1024x64xf32, #tpu.memory_space<vmem>>, vector<1024x64xf32>
    %cst = arith.constant dense<0.000000e+00> : vector<8x64xf32>
    %2 = tpu.matmul %0, %1, %cst {dimension_numbers = #tpu.dot_dimension_numbers<[1], [0], [0], [1], [0, 0, 1, 1], [], []>} : vector<8x1024xf32>, vector<1024x64xf32>, vector<8x64xf32> -> vector<8x64xf32>
    %c0_3 = arith.constant 0 : index
    %c0_4 = arith.constant 0 : index
    %3 = vector.load %arg3[%c0_3, %c0_4] : memref<1x64xf32, #tpu.memory_space<vmem>>, vector<1x64xf32>
    %4 = vector.broadcast %3 : vector<1x64xf32> to vector<8x64xf32>
    %5 = arith.addf %2, %4 : vector<8x64xf32>
    %cst_5 = arith.constant 0.000000e+00 : f32
    %6 = vector.broadcast %cst_5 : f32 to vector<8x64xf32>
    %7 = arith.maximumf %5, %6 : vector<8x64xf32>
    %c0_6 = arith.constant 0 : index
    %c0_7 = arith.constant 0 : index
    %8 = vector.load %arg4[%c0_6, %c0_7] : memref<64x128xf32, #tpu.memory_space<vmem>>, vector<64x128xf32>
    %cst_8 = arith.constant dense<0.000000e+00> : vector<8x128xf32>
    %9 = tpu.matmul %7, %8, %cst_8 {dimension_numbers = #tpu.dot_dimension_numbers<[1], [0], [0], [1], [0, 0, 1, 1], [], []>} : vector<8x64xf32>, vector<64x128xf32>, vector<8x128xf32> -> vector<8x128xf32>
    %c0_9 = arith.constant 0 : index
    %c0_10 = arith.constant 0 : index
    %10 = vector.load %arg5[%c0_9, %c0_10] : memref<1x128xf32, #tpu.memory_space<vmem>>, vector<1x128xf32>
    %11 = vector.broadcast %10 : vector<1x128xf32> to vector<8x128xf32>
    %12 = arith.addf %9, %11 : vector<8x128xf32>
    %c0_11 = arith.constant 0 : index
    %c0_12 = arith.constant 0 : index
    %13 = vector.load %arg6[%c0_11, %c0_12] : memref<8x128xf32, #tpu.memory_space<vmem>>, vector<8x128xf32>
    tpu.vector_store %arg6[%c0_11, %c0_12], %12 {strides = array<i32>} : memref<8x128xf32, #tpu.memory_space<vmem>>, vector<8x128xf32>,
    return
  }
  func.func @transform_0(%arg0: i32) -> (i32, i32) {
    %c0_i32 = arith.constant 0 : i32
    %c0_i32_0 = arith.constant 0 : i32
    return %arg0, %c0_i32 : i32, i32
  }
  func.func @transform_1(%arg0: i32) -> (i32, i32) {
    %c0_i32 = arith.constant 0 : i32
    %c0_i32_0 = arith.constant 0 : i32
    %c0_i32_1 = arith.constant 0 : i32
    return %c0_i32, %c0_i32_0 : i32, i32
  }
  func.func @transform_2(%arg0: i32) -> (i32, i32) {
    %c0_i32 = arith.constant 0 : i32
    %c0_i32_0 = arith.constant 0 : i32
    %c0_i32_1 = arith.constant 0 : i32
    return %c0_i32, %c0_i32_0 : i32, i32
  }
  func.func @transform_3(%arg0: i32) -> (i32, i32) {
    %c0_i32 = arith.constant 0 : i32
    %c0_i32_0 = arith.constant 0 : i32
    %c0_i32_1 = arith.constant 0 : i32
    return %c0_i32, %c0_i32_0 : i32, i32
  }
  func.func @transform_4(%arg0: i32) -> (i32, i32) {
    %c0_i32 = arith.constant 0 : i32
    %c0_i32_0 = arith.constant 0 : i32
    %c0_i32_1 = arith.constant 0 : i32
    return %c0_i32, %c0_i32_0 : i32, i32
  }
  func.func @transform_5(%arg0: i32) -> (i32, i32) {
    %c0_i32 = arith.constant 0 : i32
    %c0_i32_0 = arith.constant 0 : i32
    return %arg0, %c0_i32 : i32, i32
  }
}

</mosaic_0001>

<bundles_post_ra>
// kernel: tpu_custom_call.1
= control target key start
LH: loop header
LB: loop body
LE: loop exit
PB: predicated region body
PF: predicated region fallthrough
CT: control target
= control target key end

     0   :  { %s1372_s0 = inlined_call_operand.vmem [shape: f32[8,1024], index: 0, kind: input, shape index: {}]   ;;  %s1373_s1 = inlined_call_operand.vmem [shape: f32[1024,64], index: 1, kind: input, shape index: {}]   ;;  %s1374_s2 = inlined_call_operand.vmem [shape: f32[1,64], index: 2, kind: input, shape index: {}]   ;;  %s1375_s3 = inlined_call_operand.vmem [shape: f32[64,128], index: 3, kind: input, shape index: {}]   ;;  %s1376_s4 = inlined_call_operand.vmem [shape: f32[1,128], index: 4, kind: input, shape index: {}]   ;;  %s1377_s5 = inlined_call_operand.hbm [shape: f32[8,128], index: 5, kind: output, shape index: {}]  }
   0x1   :  { %v45_v0 = vld [vmem:[%s1373_s1 + $0x80] sm:$0xff]  ;;  %v46_v1 = vld [vmem:[%s1373_s1 + $0x88] sm:$0xff]  ;;  %v47_v11 = vld [vmem:[%s1373_s1 + $0x90] sm:$0xff] }
   0x2   :  { %v29_v2 = vld [vmem:[%s1373_s1] sm:$0xff]  ;;  %v720_v3 = vpack.c.bf16 %v46_v1, %v45_v0  ;;  %v30_v4 = vld [vmem:[%s1373_s1 + $0x8] sm:$0xff]  ;;  %v48_v13 = vld [vmem:[%s1373_s1 + $0x98] sm:$0xff] }
   0x3   :  { %v77_v5 = vld [vmem:[%s1373_s1 + $0x180] sm:$0xff]  ;;  %v78_v6 = vld [vmem:[%s1373_s1 + $0x188] sm:$0xff]  ;;  %v722_v7 = vpack.c.bf16 %v30_v4, %v29_v2  ;;  %v31_v14 = vld [vmem:[%s1373_s1 + $0x10] sm:$0xff]  ;;  %v724_v16 = vpack.c.bf16 %v48_v13, %v47_v11 }
   0x4   :  { %v752_v8 = vpack.c.bf16 %v78_v6, %v77_v5  ;;  %v61_v9 = vld [vmem:[%s1373_s1 + $0x100] sm:$0xff]  ;;  %v62_v10 = vld [vmem:[%s1373_s1 + $0x108] sm:$0xff]  ;;  %721 = vmatprep.subr.bf16.mxu0 %v720_v3  ;;  %v32_v15 = vld [vmem:[%s1373_s1 + $0x18] sm:$0xff] }
   0x5   :  { %v754_v12 = vpack.c.bf16 %v62_v10, %v61_v9  ;;  %723 = vmatpush3.bf16.msra.mxu0 %v722_v7  ;;  %v726_v17 = vpack.c.bf16 %v32_v15, %v31_v14  ;;  %v79_v18 = vld [vmem:[%s1373_s1 + $0x190] sm:$0xff]  ;;  %v80_v19 = vld [vmem:[%s1373_s1 + $0x198] sm:$0xff]  ;;  %v49_v23 = vld [vmem:[%s1373_s1 + $0xa0] sm:$0xff] }
   0x6   :  { %753 = vmatprep.subr.bf16.mxu1 %v752_v8  ;;  %v63_v20 = vld [vmem:[%s1373_s1 + $0x110] sm:$0xff]  ;;  %v756_v21 = vpack.c.bf16 %v80_v19, %v79_v18  ;;  %v64_v22 = vld [vmem:[%s1373_s1 + $0x118] sm:$0xff]  ;;  %v50_v24 = vld [vmem:[%s1373_s1 + $0xa8] sm:$0xff]  ;;  %725 = vmatprep.subr.bf16.mxu0 %v724_v16 }
   0x7   :  { %755 = vmatpush3.bf16.msra.mxu1 %v754_v12  ;;  %v758_v25 = vpack.c.bf16 %v64_v22, %v63_v20  ;;  %v728_v26 = vpack.c.bf16 %v50_v24, %v49_v23  ;;  %v33_v27 = vld [vmem:[%s1373_s1 + $0x20] sm:$0xff]  ;;  %v34_v28 = vld [vmem:[%s1373_s1 + $0x28] sm:$0xff]  ;;  %v51_v35 = vld [vmem:[%s1373_s1 + $0xb0] sm:$0xff] }
   0x8   :  { %v81_v29 = vld [vmem:[%s1373_s1 + $0x1a0] sm:$0xff]  ;;  %757 = vmatprep.subr.bf16.mxu1 %v756_v21  ;;  %v82_v30 = vld [vmem:[%s1373_s1 + $0x1a8] sm:$0xff]  ;;  %v730_v33 = vpack.c.bf16 %v34_v28, %v33_v27  ;;  %v52_v36 = vld [vmem:[%s1373_s1 + $0xb8] sm:$0xff] }
   0x9   :  { %v65_v31 = vld [vmem:[%s1373_s1 + $0x120] sm:$0xff]  ;;  %v66_v32 = vld [vmem:[%s1373_s1 + $0x128] sm:$0xff]  ;;  %727 = vmatpush3.bf16.msra.mxu0 %v726_v17  ;;  %v760_v34 = vpack.c.bf16 %v82_v30, %v81_v29  ;;  %v35_v37 = vld [vmem:[%s1373_s1 + $0x30] sm:$0xff]  ;;  %v732_v39 = vpack.c.bf16 %v52_v36, %v51_v35 }
   0xa   :  { %729 = vmatprep.subr.bf16.mxu0 %v728_v26  ;;  %v762_v38 = vpack.c.bf16 %v66_v32, %v65_v31  ;;  %v36_v40 = vld [vmem:[%s1373_s1 + $0x38] sm:$0xff]  ;;  %v83_v41 = vld [vmem:[%s1373_s1 + $0x1b0] sm:$0xff]  ;;  %v53_v46 = vld [vmem:[%s1373_s1 + $0xc0] sm:$0xff] }
   0xb   :  { %759 = vmatpush3.bf16.msra.mxu1 %v758_v25  ;;  %v84_v42 = vld [vmem:[%s1373_s1 + $0x1b8] sm:$0xff]  ;;  %v67_v44 = vld [vmem:[%s1373_s1 + $0x130] sm:$0xff]  ;;  %v54_v47 = vld [vmem:[%s1373_s1 + $0xc8] sm:$0xff]  ;;  %v734_v48 = vpack.c.bf16 %v36_v40, %v35_v37 }
   0xc   :  { %761 = vmatprep.subr.bf16.mxu1 %v760_v34  ;;  %v764_v43 = vpack.c.bf16 %v84_v42, %v83_v41  ;;  %v68_v45 = vld [vmem:[%s1373_s1 + $0x138] sm:$0xff]  ;;  %v85_v49 = vld [vmem:[%s1373_s1 + $0x1c0] sm:$0xff]  ;;  %v86_v50 = vld [vmem:[%s1373_s1 + $0x1c8] sm:$0xff]  ;;  %v736_v52 = vpack.c.bf16 %v54_v47, %v53_v46 }
   0xd   :  { %731 = vmatpush3.bf16.msra.mxu0 %v730_v33  ;;  %v766_v51 = vpack.c.bf16 %v68_v45, %v67_v44  ;;  %v37_v53 = vld [vmem:[%s1373_s1 + $0x40] sm:$0xff]  ;;  %v38_v54 = vld [vmem:[%s1373_s1 + $0x48] sm:$0xff]  ;;  %v768_v56 = vpack.c.bf16 %v86_v50, %v85_v49  ;;  %v55_v58 = vld [vmem:[%s1373_s1 + $0xd0] sm:$0xff] }
   0xe   :  { %733 = vmatprep.subr.bf16.mxu0 %v732_v39  ;;  %v69_v55 = vld [vmem:[%s1373_s1 + $0x140] sm:$0xff]  ;;  %v70_v57 = vld [vmem:[%s1373_s1 + $0x148] sm:$0xff]  ;;  %v56_v59 = vld [vmem:[%s1373_s1 + $0xd8] sm:$0xff]  ;;  %v738_v62 = vpack.c.bf16 %v38_v54, %v37_v53 }
   0xf   :  { %763 = vmatpush3.bf16.msra.mxu1 %v762_v38  ;;  %v87_v60 = vld [vmem:[%s1373_s1 + $0x1d0] sm:$0xff]  ;;  %v88_v61 = vld [vmem:[%s1373_s1 + $0x1d8] sm:$0xff]  ;;  %v770_v63 = vpack.c.bf16 %v70_v57, %v69_v55  ;;  %v740_v0 = vpack.c.bf16 %v56_v59, %v55_v58  ;;  %v57_v6 = vld [vmem:[%s1373_s1 + $0xe0] sm:$0xff] }
  0x10   :  { %765 = vmatprep.subr.bf16.mxu1 %v764_v43  ;;  %v39_v1 = vld [vmem:[%s1373_s1 + $0x50] sm:$0xff]  ;;  %v40_v2 = vld [vmem:[%s1373_s1 + $0x58] sm:$0xff]  ;;  %v772_v4 = vpack.c.bf16 %v88_v61, %v87_v60  ;;  %v58_v7 = vld [vmem:[%s1373_s1 + $0xe8] sm:$0xff] }
  0x11   :  { %735 = vmatpush3.bf16.msra.mxu0 %v734_v48  ;;  %v71_v3 = vld [vmem:[%s1373_s1 + $0x150] sm:$0xff]  ;;  %v72_v5 = vld [vmem:[%s1373_s1 + $0x158] sm:$0xff]  ;;  %v89_v8 = vld [vmem:[%s1373_s1 + $0x1e0] sm:$0xff]  ;;  %v742_v10 = vpack.c.bf16 %v40_v2, %v39_v1  ;;  %v744_v14 = vpack.c.bf16 %v58_v7, %v57_v6 }
  0x12   :  { %737 = vmatprep.subr.bf16.mxu0 %v736_v52  ;;  %v90_v9 = vld [vmem:[%s1373_s1 + $0x1e8] sm:$0xff]  ;;  %v41_v11 = vld [vmem:[%s1373_s1 + $0x60] sm:$0xff]  ;;  %v774_v13 = vpack.c.bf16 %v72_v5, %v71_v3  ;;  %v59_v19 = vld [vmem:[%s1373_s1 + $0xf0] sm:$0xff] }
  0x13   :  { %767 = vmatpush3.bf16.msra.mxu1 %v766_v51  ;;  %v42_v12 = vld [vmem:[%s1373_s1 + $0x68] sm:$0xff]  ;;  %v73_v15 = vld [vmem:[%s1373_s1 + $0x160] sm:$0xff]  ;;  %v776_v18 = vpack.c.bf16 %v90_v9, %v89_v8  ;;  %v60_v20 = vld [vmem:[%s1373_s1 + $0xf8] sm:$0xff] }
  0x14   :  { %769 = vmatprep.subr.bf16.mxu1 %v768_v56  ;;  %v74_v16 = vld [vmem:[%s1373_s1 + $0x168] sm:$0xff]  ;;  %v24_v21 = vld [vmem:[%s1372_s0 + $0x18] sm:$0xff]  ;;  %v91_v22 = vld [vmem:[%s1373_s1 + $0x1f0] sm:$0xff]  ;;  %v746_v24 = vpack.c.bf16 %v42_v12, %v41_v11  ;;  %v748_v26 = vpack.c.bf16 %v60_v20, %v59_v19 }
  0x15   :  { %739 = vmatpush3.bf16.msra.mxu0 %v738_v62  ;;  %v22_v17 = vld [vmem:[%s1372_s0 + $0x8] sm:$0xff]  ;;  %v92_v23 = vld [vmem:[%s1373_s1 + $0x1f8] sm:$0xff]  ;;  %298 = vmatprep.mubr.f32.mxu1 %v24_v21  ;;  %v778_v25 = vpack.c.bf16 %v74_v16, %v73_v15  ;;  %v43_v27 = vld [vmem:[%s1373_s1 + $0x70] sm:$0xff] }
  0x16   :  { %741 = vmatprep.subr.bf16.mxu0 %v740_v0  ;;  %228 = vmatprep.mubr.f32.mxu0 %v22_v17  ;;  %v44_v28 = vld [vmem:[%s1373_s1 + $0x78] sm:$0xff]  ;;  %v75_v29 = vld [vmem:[%s1373_s1 + $0x170] sm:$0xff]  ;;  %v780_v30 = vpack.c.bf16 %v92_v23, %v91_v22  ;;  %v109_v32 = vld [vmem:[%s1373_s1 + $0x280] sm:$0xff] }
  0x17   :  { %771 = vmatpush3.bf16.msra.mxu1 %v770_v63  ;;  %v76_v31 = vld [vmem:[%s1373_s1 + $0x178] sm:$0xff]  ;;  %v110_v33 = vld [vmem:[%s1373_s1 + $0x288] sm:$0xff]  ;;  %v141_v34 = vld [vmem:[%s1373_s1 + $0x380] sm:$0xff]  ;;  %v750_v36 = vpack.c.bf16 %v44_v28, %v43_v27 }
  0x18   :  { %773 = vmatprep.subr.bf16.mxu1 %v772_v4  ;;  %v142_v35 = vld [vmem:[%s1373_s1 + $0x388] sm:$0xff]  ;;  %v782_v37 = vpack.c.bf16 %v76_v31, %v75_v29  ;;  %v784_v38 = vpack.c.bf16 %v110_v33, %v109_v32  ;;  %v93_v39 = vld [vmem:[%s1373_s1 + $0x200] sm:$0xff]  ;;  %v111_v44 = vld [vmem:[%s1373_s1 + $0x290] sm:$0xff] }
  0x19   :  { %743 = vmatpush3.bf16.msra.mxu0 %v742_v10  ;;  %v94_v40 = vld [vmem:[%s1373_s1 + $0x208] sm:$0xff]  ;;  %v125_v41 = vld [vmem:[%s1373_s1 + $0x300] sm:$0xff]  ;;  %v816_v42 = vpack.c.bf16 %v142_v35, %v141_v34  ;;  %v112_v45 = vld [vmem:[%s1373_s1 + $0x298] sm:$0xff] }
  0x1a   :  { %745 = vmatprep.subr.bf16.mxu0 %v744_v14  ;;  %v126_v43 = vld [vmem:[%s1373_s1 + $0x308] sm:$0xff]  ;;  %v143_v46 = vld [vmem:[%s1373_s1 + $0x390] sm:$0xff]  ;;  %v144_v47 = vld [vmem:[%s1373_s1 + $0x398] sm:$0xff]  ;;  %v786_v49 = vpack.c.bf16 %v94_v40, %v93_v39  ;;  %v788_v52 = vpack.c.bf16 %v112_v45, %v111_v44 }
  0x1b   :  { %775 = vmatpush3.bf16.msra.mxu1 %v774_v13  ;;  %v21_v48 = vld [vmem:[%s1372_s0] sm:$0xff]  ;;  %v23_v50 = vld [vmem:[%s1372_s0 + $0x10] sm:$0xff]  ;;  %v818_v51 = vpack.c.bf16 %v126_v43, %v125_v41  ;;  %v96_v54 = vld [vmem:[%s1373_s1 + $0x218] sm:$0xff]  ;;  %v820_v56 = vpack.c.bf16 %v144_v47, %v143_v46 }
  0x1c   :  { %777 = vmatprep.subr.bf16.mxu1 %v776_v18  ;;  %v95_v53 = vld [vmem:[%s1373_s1 + $0x210] sm:$0xff]  ;;  %v128_v57 = vld [vmem:[%s1373_s1 + $0x318] sm:$0xff]  ;;  %v113_v58 = vld [vmem:[%s1373_s1 + $0x2a0] sm:$0xff] }
  0x1d   :  { %747 = vmatpush3.bf16.msra.mxu0 %v746_v24  ;;  %v127_v55 = vld [vmem:[%s1373_s1 + $0x310] sm:$0xff]  ;;  %v114_v59 = vld [vmem:[%s1373_s1 + $0x2a8] sm:$0xff]  ;;  %v145_v60 = vld [vmem:[%s1373_s1 + $0x3a0] sm:$0xff]  ;;  %v790_v62 = vpack.c.bf16 %v96_v54, %v95_v53 }
  0x1e   :  { %749 = vmatprep.subr.bf16.mxu0 %v748_v26  ;;  %v146_v61 = vld [vmem:[%s1373_s1 + $0x3a8] sm:$0xff]  ;;  %v822_v63 = vpack.c.bf16 %v128_v57, %v127_v55  ;;  %v792_v0 = vpack.c.bf16 %v114_v59, %v113_v58  ;;  %v97_v1 = vld [vmem:[%s1373_s1 + $0x220] sm:$0xff]  ;;  %v115_v6 = vld [vmem:[%s1373_s1 + $0x2b0] sm:$0xff] }
  0x1f   :  { %779 = vmatpush3.bf16.msra.mxu1 %v778_v25  ;;  %v98_v2 = vld [vmem:[%s1373_s1 + $0x228] sm:$0xff]  ;;  %v129_v3 = vld [vmem:[%s1373_s1 + $0x320] sm:$0xff]  ;;  %v824_v4 = vpack.c.bf16 %v146_v61, %v145_v60  ;;  %v116_v7 = vld [vmem:[%s1373_s1 + $0x2b8] sm:$0xff] }
  0x20   :  { %781 = vmatprep.subr.bf16.mxu1 %v780_v30  ;;  %v130_v5 = vld [vmem:[%s1373_s1 + $0x328] sm:$0xff]  ;;  %v147_v8 = vld [vmem:[%s1373_s1 + $0x3b0] sm:$0xff]  ;;  %v148_v9 = vld [vmem:[%s1373_s1 + $0x3b8] sm:$0xff]  ;;  %v794_v10 = vpack.c.bf16 %v98_v2, %v97_v1  ;;  %v796_v12 = vpack.c.bf16 %v116_v7, %v115_v6 }
  0x21   :  { %751 = vmatpush3.bf16.msra.mxu0 %v750_v36  ;;  %v826_v11 = vpack.c.bf16 %v130_v5, %v129_v3  ;;  %v99_v13 = vld [vmem:[%s1373_s1 + $0x230] sm:$0xff]  ;;  %v100_v14 = vld [vmem:[%s1373_s1 + $0x238] sm:$0xff]  ;;  %v828_v16 = vpack.c.bf16 %v148_v9, %v147_v8  ;;  %v117_v18 = vld [vmem:[%s1373_s1 + $0x2c0] sm:$0xff] }
  0x22   :  { %785 = vmatprep.subr.bf16.mxu0 %v784_v38  ;;  %v131_v15 = vld [vmem:[%s1373_s1 + $0x330] sm:$0xff]  ;;  %v132_v17 = vld [vmem:[%s1373_s1 + $0x338] sm:$0xff]  ;;  %v118_v19 = vld [vmem:[%s1373_s1 + $0x2c8] sm:$0xff]  ;;  %v798_v22 = vpack.c.bf16 %v100_v14, %v99_v13 }
  0x23   :  { %783 = vmatpush3.bf16.msra.mxu1 %v782_v37  ;;  %v149_v20 = vld [vmem:[%s1373_s1 + $0x3c0] sm:$0xff]  ;;  %v150_v21 = vld [vmem:[%s1373_s1 + $0x3c8] sm:$0xff]  ;;  %v28_v25 = vld [vmem:[%s1372_s0 + $0x38] sm:$0xff]  ;;  %v830_v26 = vpack.c.bf16 %v132_v17, %v131_v15  ;;  %v800_v27 = vpack.c.bf16 %v118_v19, %v117_v18 }
  0x24   :  { %817 = vmatprep.subr.bf16.mxu1 %v816_v42  ;;  %229 = vmatmul.mubr.f32.vlgmr.msra.gmra.mrb[0].mxu0 %v21_v48  ;;  %v101_v23 = vld [vmem:[%s1373_s1 + $0x240] sm:$0xff]  ;;  %v26_v24 = vld [vmem:[%s1372_s0 + $0x28] sm:$0xff] }
  0x25   :  { %787 = vmatpush3.bf16.msra.mxu0 %v786_v49  ;;  %v102_v28 = vld [vmem:[%s1373_s1 + $0x248] sm:$0xff]  ;;  %v133_v29 = vld [vmem:[%s1373_s1 + $0x340] sm:$0xff] }
  0x26   :  { %299 = vmatmul.mubr.f32.vlgmr.msra.gmra.mrb[0].mxu1 %v23_v50  ;;  %789 = vmatprep.subr.bf16.mxu0 %v788_v52 }
  0x27   :  { %819 = vmatpush3.bf16.msra.mxu1 %v818_v51 }
  0x28   :  { %821 = vmatprep.subr.bf16.mxu1 %v820_v56 }
  0x29   :  { %791 = vmatpush3.bf16.msra.mxu0 %v790_v62 }
  0x2a   :  { %793 = vmatprep.subr.bf16.mxu0 %v792_v0 }
  0x2b   :  { %823 = vmatpush3.bf16.msra.mxu1 %v822_v63 }
  0x2c   :  { %825 = vmatprep.subr.bf16.mxu1 %v824_v4 }
  0x2d   :  { %795 = vmatpush3.bf16.msra.mxu0 %v794_v10 }
  0x2e   :  { %797 = vmatprep.subr.bf16.mxu0 %v796_v12 }
  0x2f   :  { %827 = vmatpush3.bf16.msra.mxu1 %v826_v11 }
  0x30   :  { %10 = vsyncpa [#allocation3], 0  ;;  %829 = vmatprep.subr.bf16.mxu1 %v828_v16  ;;  %v832_v30 = vpack.c.bf16 %v150_v21, %v149_v20  ;;  %v134_v31 = vld [vmem:[%s1373_s1 + $0x348] sm:$0xff]  ;;  %v119_v32 = vld [vmem:[%s1373_s1 + $0x2d0] sm:$0xff]  ;;  %368 = vmatprep.mubr.f32.mxu0 %v26_v24  ;;  %v802_v36 = vpack.c.bf16 %v102_v28, %v101_v23  ;;  %v888_v11 = vmov 0.0|0.0   ;;  %vm889_vm0 = vmmov 0  }
  0x31   :  { %v120_v33 = vld [vmem:[%s1373_s1 + $0x2d8] sm:$0xff]  ;;  %v151_v34 = vld [vmem:[%s1373_s1 + $0x3d0] sm:$0xff]  ;;  %438 = vmatprep.mubr.f32.mxu1 %v28_v25  ;;  %799 = vmatpush3.bf16.msra.mxu0 %v798_v22  ;;  %v834_v37 = vpack.c.bf16 %v134_v31, %v133_v29  ;;  %v121_v44 = vld [vmem:[%s1373_s1 + $0x2e0] sm:$0xff]  ;;  %v890_v21 = vmov 0.0   ;;  %vm460_vm1 = vcmask 523264   ;;  %s891_s6 = smov [#allocation2]  }
  0x32   :  { %v152_v35 = vld [vmem:[%s1373_s1 + $0x3d8] sm:$0xff]  ;;  %801 = vmatprep.subr.bf16.mxu0 %v800_v27  ;;  %v804_v38 = vpack.c.bf16 %v120_v33, %v119_v32  ;;  %v103_v39 = vld [vmem:[%s1373_s1 + $0x250] sm:$0xff]  ;;  %v122_v45 = vld [vmem:[%s1373_s1 + $0x2e8] sm:$0xff]  ;;  %s541_s7 = sshll.u32 %s891_s6, 4  ;;  %s542_s7 = int_to_ptr.vmem [resolvable:$true] %s541_s7 }
  0x33   :  { %831 = vmatpush3.bf16.msra.mxu1 %v830_v26  ;;  %v104_v40 = vld [vmem:[%s1373_s1 + $0x258] sm:$0xff]  ;;  %v135_v41 = vld [vmem:[%s1373_s1 + $0x350] sm:$0xff]  ;;  %v836_v42 = vpack.c.bf16 %v152_v35, %v151_v34  ;;  %v153_v46 = vld [vmem:[%s1373_s1 + $0x3e0] sm:$0xff]  ;;  %v808_v50 = vpack.c.bf16 %v122_v45, %v121_v44  ;;  %s864_s8 = scalar_lea.vmem %s542_s7, 128  ;;  %p869_p1 = scmp.lt.s32.totalorder %s542_s7, %s542_s7 }
  0x34   :  { %833 = vmatprep.subr.bf16.mxu1 %v832_v30  ;;  %v136_v43 = vld [vmem:[%s1373_s1 + $0x358] sm:$0xff]  ;;  %v154_v47 = vld [vmem:[%s1373_s1 + $0x3e8] sm:$0xff]  ;;  %v806_v48 = vpack.c.bf16 %v104_v40, %v103_v39  ;;  %v105_v51 = vld [vmem:[%s1373_s1 + $0x260] sm:$0xff]  ;;  %p865_p0 = scmp.ne.s32.totalorder %s542_s7, %s864_s8  ;;  %p870_p2 = scmp.lt.s32.totalorder %s864_s8, %s864_s8 }
  0x35   :  { %803 = vmatpush3.bf16.msra.mxu0 %v802_v36  ;;  %v838_v49 = vpack.c.bf16 %v136_v43, %v135_v41  ;;  %v106_v52 = vld [vmem:[%s1373_s1 + $0x268] sm:$0xff]  ;;  %v137_v53 = vld [vmem:[%s1373_s1 + $0x360] sm:$0xff]  ;;  %v840_v54 = vpack.c.bf16 %v154_v47, %v153_v46  ;;  %v123_v56 = vld [vmem:[%s1373_s1 + $0x2f0] sm:$0xff] }
  0x36   :  { %805 = vmatprep.subr.bf16.mxu0 %v804_v38  ;;  %v138_v55 = vld [vmem:[%s1373_s1 + $0x368] sm:$0xff]  ;;  %v124_v57 = vld [vmem:[%s1373_s1 + $0x2f8] sm:$0xff]  ;;  %v155_v58 = vld [vmem:[%s1373_s1 + $0x3f0] sm:$0xff]  ;;  %v810_v60 = vpack.c.bf16 %v106_v52, %v105_v51  ;;  %p871_p3 = por %p870_p2, %p869_p1 }
  0x37   :  { %835 = vmatpush3.bf16.msra.mxu1 %v834_v37  ;;  %v156_v59 = vld [vmem:[%s1373_s1 + $0x3f8] sm:$0xff]  ;;  %v842_v61 = vpack.c.bf16 %v138_v55, %v137_v53  ;;  %v812_v62 = vpack.c.bf16 %v124_v57, %v123_v56  ;;  %v107_v63 = vld [vmem:[%s1373_s1 + $0x270] sm:$0xff]  ;;  %v25_v6 = vld [vmem:[%s1372_s0 + $0x20] sm:$0xff] }
  0x38   :  { %837 = vmatprep.subr.bf16.mxu1 %v836_v42  ;;  %v108_v0 = vld [vmem:[%s1373_s1 + $0x278] sm:$0xff]  ;;  %v844_v1 = vpack.c.bf16 %v156_v59, %v155_v58  ;;  %v139_v2 = vld [vmem:[%s1373_s1 + $0x370] sm:$0xff]  ;;  %v445_v8 = vld [vmem:[%s1375_s3] sm:$0xff]  ;;  %p872_p4 = pnand %p871_p3, %p865_p0 }
  0x39   :  { %807 = vmatpush3.bf16.msra.mxu0 %v806_v48  ;;  %v140_v3 = vld [vmem:[%s1373_s1 + $0x378] sm:$0xff]  ;;  %v814_v4 = vpack.c.bf16 %v108_v0, %v107_v63  ;;  %v27_v7 = vld [vmem:[%s1372_s0 + $0x30] sm:$0xff]  ;;  %v446_v9 = vld [vmem:[%s1375_s3 + $0x8] sm:$0xff] }
  0x3a   :  { %809 = vmatprep.subr.bf16.mxu0 %v808_v50  ;;  %v846_v5 = vpack.c.bf16 %v140_v3, %v139_v2  ;;  %v447_v10 = vld [vmem:[%s1375_s3 + $0x10] sm:$0xff]  ;;  %v849_v12 = vpack.c.bf16 %v446_v9, %v445_v8  ;;  %v448_v13 = vld [vmem:[%s1375_s3 + $0x18] sm:$0xff]  ;;  %v449_v15 = vld [vmem:[%s1375_s3 + $0x20] sm:$0xff] }
  0x3b   :  { %839 = vmatpush3.bf16.msra.mxu1 %v838_v49  ;;  %v852_v14 = vpack.c.bf16 %v448_v13, %v447_v10  ;;  %v450_v16 = vld [vmem:[%s1375_s3 + $0x28] sm:$0xff]  ;;  %v451_v18 = vld [vmem:[%s1375_s3 + $0x30] sm:$0xff]  ;;  %v452_v19 = vld [vmem:[%s1375_s3 + $0x38] sm:$0xff] }
  0x3c   :  { %841 = vmatprep.subr.bf16.mxu1 %v840_v54  ;;  %v855_v17 = vpack.c.bf16 %v450_v16, %v449_v15  ;;  %v858_v20 = vpack.c.bf16 %v452_v19, %v451_v18  ;;  %v549_v23 = vld [vmem:[%s1374_s2] ss:$0 sm:$0xff] }
  0x3d   :  { %811 = vmatpush3.bf16.msra.mxu0 %v810_v60  ;;  %v550_v40 = vld [vmem:[%s1376_s4] ss:$0 sm:$0xff] }
  0x3e   :  { %813 = vmatprep.subr.bf16.mxu0 %v812_v62 }
  0x3f   :  { %843 = vmatpush3.bf16.msra.mxu1 %v842_v61 }
  0x40   :  { %845 = vmatprep.subr.bf16.mxu1 %v844_v1 }
  0x41   :  { %815 = vmatpush3.bf16.msra.mxu0 %v814_v4 }
  0x42   :  { %848 = vmatprep.subr.bf16.mxu0 %v888_v11 }
  0x43   :  { %847 = vmatpush3.bf16.msra.mxu1 %v846_v5 }
  0x44   :  { %369 = vmatmul.mubr.f32.vlgmr.msra.gmra.mrb[2].mxu0 %v25_v6 }
  0x45   :  { %850 = vmatpush3.bf16.msra.mxu0 %v849_v12  ;;  %717 = vmatprep.mubr.msk.f32.mxu0 %vm889_vm0, %v890_v21 }
  0x46   :  { %439 = vmatmul.mubr.f32.vlgmr.msra.gmra.mrb[2].mxu1 %v27_v7  ;;  %851 = vmatprep.subr.bf16.mxu0 %v888_v11 }
  0x49   :  { %853 = vmatpush3.bf16.msra.mxu0 %v852_v14 }
  0x4a   :  { %854 = vmatprep.subr.bf16.mxu0 %v888_v11 }
  0x4d   :  { %856 = vmatpush3.bf16.msra.mxu0 %v855_v17 }
  0x4e   :  { %857 = vmatprep.subr.bf16.mxu0 %v888_v11 }
  0x51   :  { %859 = vmatpush3.bf16.msra.mxu0 %v858_v20 }
  0xf7   :  { %v584_v22 = vpop.f32.mrb[0].mxu0 }
  0xf8   :  { %v585_v24 = vpop.f32.mrb[1].mxu0 }
  0xf9   :  { %v619_v25 = vpop.f32.mrb[0].mxu1  ;;  %v586_v26 = vadd.f32 %v585_v24, %v584_v22 }
  0xfa   :  { %v620_v27 = vpop.f32.mrb[1].mxu1 }
  0xfb   :  { %v621_v28 = vadd.f32 %v620_v27, %v619_v25  ;;  %v231_v29 = vadd.f32 %v586_v26, %v549_v23 }
  0xfd   :  { %v301_v30 = vadd.f32 %v621_v28, %v231_v29 }
 0x117   :  { %v654_v31 = vpop.f32.mrb[2].mxu0 }
 0x118   :  { %v655_v32 = vpop.f32.mrb[3].mxu0 }
 0x119   :  { %v689_v33 = vpop.f32.mrb[2].mxu1  ;;  %v656_v34 = vadd.f32 %v655_v32, %v654_v31 }
 0x11a   :  { %v690_v35 = vpop.f32.mrb[3].mxu1 }
 0x11b   :  { %v691_v36 = vadd.f32 %v690_v35, %v689_v33  ;;  %v371_v37 = vadd.f32 %v656_v34, %v301_v30 }
 0x11d   :  { %v441_v38 = vadd.f32 %v691_v36, %v371_v37 }
 0x11f   :  { %v444_v39 = vmax.f32 %v441_v38, 0.0 }
 0x121   :  { %718 = vmatmul.mubr.msk.f32.vlgmr.msra.gmra.mrb[4].mxu0 %vm460_vm1, %v444_v39 }
 0x1f4   :  { %v530_v41 = vpop.f32.mrb[4].mxu0 }
 0x1f5   :  { %v531_v42 = vadd.f32 %v550_v40, %v530_v41  ;;  %v719_v43 = vpop.f32.mrb[5].mxu0 }
 0x1f7   :  { %534 = vst [vmem:[#allocation2] sm:$0xff] %v531_v42 }
 0x1f8   :  { %875 = shalt.err (!%p872_p4)
}
 0x1f9   :  { %s876_s11 = scalar_lea.hbm %s1377_s5, 128 }
 0x1fa   :  { %p877_p5 = scmp.ne.s32.totalorder %s1377_s5, %s876_s11  ;;  %p880_p6 = scmp.lt.u32.totalorder %s876_s11, %s1377_s5 }
 0x1fc   :  { %p882_p7 = pnand %p880_p6, %p877_p5 }
 0x1fe   :  { %885 = shalt.err (!%p882_p7)
}
 0x1ff   :  { %544 = dma.vmem_to_hbm [thread:$0]  %s542_s7, 128, %s1377_s5, [#allocation3]  }
 0x200   :  { %886 = dma.done.wait [#allocation3], 128  }
 0x201   :  { %887 = vsyncadd [#allocation3], 4294967168 }
 0x202   :  { %548 = vsyncpa [#allocation3], 1 }

</bundles_post_ra>
